<compile_context>
chip_gen: v5e
topology: v5e:2x2
jax: 0.10.0
libtpu: 0.0.40
codegen_flags: <defaults>
</compile_context>

<pallas_src>
import jax
import jax.numpy as jnp
from jax import lax
from jax.experimental import pallas as pl
from jax.experimental.pallas import tpu as pltpu

EPS = 1e-5


# ----------------------------- in-kernel helpers -----------------------------

def _conv3x3_lane_dense(h_f32, wb_ref):
    """3x3 conv, stride 1, pad 1, on a lane-dense (H, W*C) activation slab.

    h_f32:  (H, W*C) f32 activations of one image (lane index = w*C + c).
    wb_ref: (3, W*C, W*C) bf16 banded weights; wb_ref[kh] folds the 3 kw taps.
    Returns (H, W*C) f32.
    """
    H, WC = h_f32.shape
    zrow = jnp.zeros((1, WC), jnp.float32)
    # Row h of h_up holds h_f32[h-1] (zero at the top boundary); h_dn holds h_f32[h+1].
    h_up = jnp.concatenate([zrow, h_f32[:-1, :]], axis=0)
    h_dn = jnp.concatenate([h_f32[1:, :], zrow], axis=0)
    return (
        jnp.dot(h_up.astype(jnp.bfloat16), wb_ref[0], preferred_element_type=jnp.float32)
        + jnp.dot(h_f32.astype(jnp.bfloat16), wb_ref[1], preferred_element_type=jnp.float32)
        + jnp.dot(h_dn.astype(jnp.bfloat16), wb_ref[2], preferred_element_type=jnp.float32)
    )


def _partial_stats(v_f32):
    """Per-lane sum and sum-of-squares in one traversal -> (2, W*C)."""
    s = jnp.sum(v_f32, axis=0, keepdims=True)
    ss = jnp.sum(v_f32 * v_f32, axis=0, keepdims=True)
    return jnp.concatenate([s, ss], axis=0)


# --------------------------------- kernels -----------------------------------

def stats_kernel(x_ref, ps_ref):
    """BN1 partial stats for one image block."""
    x = x_ref[...]
    ps_ref[...] = _partial_stats(x)[None]


def conv1_kernel(x_ref, aff_ref, wb_ref, y_ref, ps_ref):
    """Apply BN1(scale/shift)+ReLU, conv1, and emit BN2 partial stats for one image."""
    x = x_ref[...]
    h = jnp.maximum(x * aff_ref[0:1, :] + aff_ref[1:2, :], 0.0)
    y = _conv3x3_lane_dense(h, wb_ref)
    y_ref[...] = y
    ps_ref[...] = _partial_stats(y)[None]


def conv2_kernel(y_ref, x_ref, aff_ref, wb_ref, o_ref):
    """Apply BN2(scale/shift)+ReLU, conv2, add the residual for one image."""
    y = y_ref[...]
    h = jnp.maximum(y * aff_ref[0:1, :] + aff_ref[1:2, :], 0.0)
    out = _conv3x3_lane_dense(h, wb_ref)
    o_ref[...] = (out + x_ref[...]).astype(o_ref.dtype)


# --------------------------------- wrapper ------------------------------------

def _banded_weights(w_hwio, W):
    """(3,3,Cin,Cout) HWIO -> (3, W*C, W*C) bf16 banded block-Toeplitz matrices.

    For lane layout lane = w*C + c:  M[kh][(w+dw)*C + ci, w*C + co] = w_hwio[kh, dw+1, ci, co]
    for dw in {-1,0,1}; boundary blocks are dropped (== zero padding along W).
    Note: this banded form targets the small-C regime (W*C ~ 128); for C >= 128 you would tile
    channels directly instead.
    """
    C = w_hwio.shape[2]
    mats = []
    for kh in range(3):
        m = jnp.zeros((W * C, W * C), jnp.float32)
        for kw in range(3):
            dw = kw - 1
            m = m + jnp.kron(jnp.eye(W, k=-dw, dtype=jnp.float32), w_hwio[kh, kw])
        mats.append(m)
    return jnp.stack(mats).astype(jnp.bfloat16)


def _bn_affine(ps, gamma, beta, count, W, C):
    """Finalize partial stats (2, W*C) into lane-expanded (2, W*C) [scale; shift]."""
    s = ps[0].reshape(W, C).sum(axis=0)
    ss = ps[1].reshape(W, C).sum(axis=0)
    mean = s / count
    var = jnp.maximum(ss / count - mean * mean, 0.0)   # biased variance, clamped
    scale = gamma * lax.rsqrt(var + EPS)
    shift = beta - mean * scale
    return jnp.stack([jnp.tile(scale, W), jnp.tile(shift, W)]).astype(jnp.float32)


def preact_basic_block(x_nchw, g1, b1, w1, g2, b2, w2):
    """x_nchw: (N, C, H, W) f32; w*: (3,3,C,C) HWIO; g*/b*: (C,)."""
    N, C, H, W = x_nchw.shape
    WC = W * C                      # lane width of the working layout (128 for the demo shape)
    n_stat = N * H * W

    # NCHW -> NHWC -> lane-dense (N*H, W*C) slab (wrapper-side layout plumbing).
    x_l = jnp.transpose(x_nchw, (0, 2, 3, 1)).reshape(N * H, WC).astype(jnp.float32)
    wb1 = _banded_weights(w1, W)
    wb2 = _banded_weights(w2, W)

    cp = pltpu.CompilerParams(
        dimension_semantics=("parallel",),
        vmem_limit_bytes=32 * 1024 * 1024,
    )
    img_spec = pl.BlockSpec((H, WC), lambda n: (n, 0))          # one image per grid step
    aff_spec = pl.BlockSpec((2, WC), lambda n: (0, 0))          # resident across steps
    wb_spec = pl.BlockSpec((3, WC, WC), lambda n: (0, 0, 0))    # resident across steps
    ps_spec = pl.BlockSpec((1, 2, WC), lambda n: (n, 0, 0))     # per-step partial stats

    # Pass A: BN1 partial statistics (one traversal: sum + sum-of-squares).
    ps1 = pl.pallas_call(
        stats_kernel,
        out_shape=jax.ShapeDtypeStruct((N, 2, WC), jnp.float32),
        grid=(N,),
        in_specs=[img_spec],
        out_specs=ps_spec,
        compiler_params=cp,
    )(x_l)
    aff1 = _bn_affine(ps1.sum(axis=0), g1, b1, n_stat, W, C)

    # Pass B: BN1-apply + ReLU + conv1 (+ BN2 partial stats).
    y1, ps2 = pl.pallas_call(
        conv1_kernel,
        out_shape=(
            jax.ShapeDtypeStruct((N * H, WC), jnp.float32),
            jax.ShapeDtypeStruct((N, 2, WC), jnp.float32),
        ),
        grid=(N,),
        in_specs=[img_spec, aff_spec, wb_spec],
        out_specs=(img_spec, ps_spec),
        compiler_params=cp,
    )(x_l, aff1, wb1)
    aff2 = _bn_affine(ps2.sum(axis=0), g2, b2, n_stat, W, C)

    # Pass C: BN2-apply + ReLU + conv2 + residual add.
    out = pl.pallas_call(
        conv2_kernel,
        out_shape=jax.ShapeDtypeStruct((N * H, WC), x_nchw.dtype),
        grid=(N,),
        in_specs=[img_spec, img_spec, aff_spec, wb_spec],
        out_specs=img_spec,
        compiler_params=cp,
    )(y1, x_l, aff2, wb2)

    return jnp.transpose(out.reshape(N, H, W, C), (0, 3, 1, 2))


# -------------------------------- reference -----------------------------------

def reference(x_nchw, g1, b1, w1, g2, b2, w2):
    x = jnp.transpose(x_nchw, (0, 2, 3, 1)).astype(jnp.float32)

    def bn_relu(h, g, b):
        m = jnp.mean(h, axis=(0, 1, 2), keepdims=True)
        v = jnp.mean((h - m) ** 2, axis=(0, 1, 2), keepdims=True)
        return jnp.maximum((h - m) * g / jnp.sqrt(v + EPS) + b, 0.0)

    def conv(h, w):
        return lax.conv_general_dilated(h, w, (1, 1), "SAME",
                                        dimension_numbers=("NHWC", "HWIO", "NHWC"))

    out = conv(bn_relu(x, g1, b1), w1)
    out = conv(bn_relu(out, g2, b2), w2) + x
    return jnp.transpose(out, (0, 3, 1, 2))


if __name__ == "__main__":
    N, C, H, W = 2, 8, 16, 16   # inplanes == planes, stride=1, downsample=None; W*C == 128
    key = jax.random.PRNGKey(0)
    k = jax.random.split(key, 7)

    x = jax.random.normal(k[0], (N, C, H, W), jnp.float32)
    # conv3x3 weights (PyTorch kaiming-uniform bound = 1/sqrt(fan_in)), stored HWIO.
    bound = 1.0 / (9.0 * C) ** 0.5
    w1 = jax.random.uniform(k[1], (3, 3, C, C), jnp.float32, -bound, bound)
    w2 = jax.random.uniform(k[2], (3, 3, C, C), jnp.float32, -bound, bound)
    # BatchNorm affine params (non-trivial, deterministic).
    g1 = jax.random.uniform(k[3], (C,), jnp.float32, 0.5, 1.5)
    b1 = 0.1 * jax.random.normal(k[4], (C,), jnp.float32)
    g2 = jax.random.uniform(k[5], (C,), jnp.float32, 0.5, 1.5)
    b2 = 0.1 * jax.random.normal(k[6], (C,), jnp.float32)

    fwd = jax.jit(preact_basic_block)
    out = fwd(x, g1, b1, w1, g2, b2, w2)
    jax.block_until_ready(out)

    ref = reference(x, g1, b1, w1, g2, b2, w2)
    assert out.shape == (N, C, H, W)
    max_err = float(jnp.max(jnp.abs(out - ref)))
    assert max_err < 5e-2, f"max abs err {max_err}"
    print("KERNEL_OK")
</pallas_src>

<mosaic_0001>
module attributes {stable_mosaic.version = 11 : i64} {
  func.func @stats_kernel(%arg0: i32, %arg1: memref<16x128xf32, #tpu.memory_space<vmem>>, %arg2: memref<1x2x128xf32, #tpu.memory_space<vmem>>) attributes {dimension_semantics = [#tpu.dimension_semantics<parallel>], iteration_bounds = array<i64: 2>, scalar_prefetch = 0 : i64, scratch_operands = 0 : i64, tpu.core_type = #tpu.core_type<tc>, window_params = [{transform_indices = @transform_0, window_bounds = array<i64: 16, 128>}, {transform_indices = @transform_1, window_bounds = array<i64: 1, 2, 128>}]} {
    %c0 = arith.constant 0 : index
    %c0_0 = arith.constant 0 : index
    %0 = vector.load %arg1[%c0, %c0_0] : memref<16x128xf32, #tpu.memory_space<vmem>>, vector<16x128xf32>
    %cst = arith.constant dense<0.000000e+00> : vector<128xf32>
    %1 = vector.multi_reduction <add>, %0, %cst [0] : vector<16x128xf32> to vector<128xf32>
    %2 = vector.shape_cast %1 : vector<128xf32> to vector<1x128xf32>
    %3 = arith.mulf %0, %0 : vector<16x128xf32>
    %cst_1 = arith.constant dense<0.000000e+00> : vector<128xf32>
    %4 = vector.multi_reduction <add>, %3, %cst_1 [0] : vector<16x128xf32> to vector<128xf32>
    %5 = vector.shape_cast %4 : vector<128xf32> to vector<1x128xf32>
    %6 = tpu.concatenate %2, %5 in 0 : vector<1x128xf32>, vector<1x128xf32> -> vector<2x128xf32>
    %7 = vector.shape_cast %6 : vector<2x128xf32> to vector<1x2x128xf32>
    %c0_2 = arith.constant 0 : index
    %c0_3 = arith.constant 0 : index
    %c0_4 = arith.constant 0 : index
    %8 = vector.load %arg2[%c0_2, %c0_3, %c0_4] : memref<1x2x128xf32, #tpu.memory_space<vmem>>, vector<1x2x128xf32>
    tpu.vector_store %arg2[%c0_2, %c0_3, %c0_4], %7 {strides = array<i32>} : memref<1x2x128xf32, #tpu.memory_space<vmem>>, vector<1x2x128xf32>,
    return
  }
  func.func @transform_0(%arg0: i32) -> (i32, i32) {
    %c0_i32 = arith.constant 0 : i32
    %c0_i32_0 = arith.constant 0 : i32
    return %arg0, %c0_i32 : i32, i32
  }
  func.func @transform_1(%arg0: i32) -> (i32, i32, i32) {
    %c0_i32 = arith.constant 0 : i32
    %c0_i32_0 = arith.constant 0 : i32
    %c0_i32_1 = arith.constant 0 : i32
    return %arg0, %c0_i32, %c0_i32_0 : i32, i32, i32
  }
}

module attributes {stable_mosaic.version = 11 : i64} {
  func.func @conv1_kernel(%arg0: i32, %arg1: memref<16x128xf32, #tpu.memory_space<vmem>>, %arg2: memref<2x128xf32, #tpu.memory_space<vmem>>, %arg3: memref<3x128x128xbf16, #tpu.memory_space<vmem>>, %arg4: memref<16x128xf32, #tpu.memory_space<vmem>>, %arg5: memref<1x2x128xf32, #tpu.memory_space<vmem>>) attributes {dimension_semantics = [#tpu.dimension_semantics<parallel>], iteration_bounds = array<i64: 2>, scalar_prefetch = 0 : i64, scratch_operands = 0 : i64, tpu.core_type = #tpu.core_type<tc>, window_params = [{transform_indices = @transform_0, window_bounds = array<i64: 16, 128>}, {pipeline_mode = #tpu.pipeline_mode<synchronous>, transform_indices = @transform_1, window_bounds = array<i64: 2, 128>}, {pipeline_mode = #tpu.pipeline_mode<synchronous>, transform_indices = @transform_2, window_bounds = array<i64: 3, 128, 128>}, {transform_indices = @transform_3, window_bounds = array<i64: 16, 128>}, {transform_indices = @transform_4, window_bounds = array<i64: 1, 2, 128>}]} {
    %c0 = arith.constant 0 : index
    %c0_0 = arith.constant 0 : index
    %0 = vector.load %arg1[%c0, %c0_0] : memref<16x128xf32, #tpu.memory_space<vmem>>, vector<16x128xf32>
    %c0_1 = arith.constant 0 : index
    %c0_2 = arith.constant 0 : index
    %1 = vector.load %arg2[%c0_1, %c0_2] : memref<2x128xf32, #tpu.memory_space<vmem>>, vector<1x128xf32>
    %2 = vector.broadcast %1 : vector<1x128xf32> to vector<16x128xf32>
    %3 = arith.mulf %0, %2 : vector<16x128xf32>
    %c1 = arith.constant 1 : index
    %c0_3 = arith.constant 0 : index
    %4 = vector.load %arg2[%c1, %c0_3] : memref<2x128xf32, #tpu.memory_space<vmem>>, vector<1x128xf32>
    %5 = vector.broadcast %4 : vector<1x128xf32> to vector<16x128xf32>
    %6 = arith.addf %3, %5 : vector<16x128xf32>
    %cst = arith.constant 0.000000e+00 : f32
    %7 = vector.broadcast %cst : f32 to vector<16x128xf32>
    %8 = arith.maximumf %6, %7 : vector<16x128xf32>
    %cst_4 = arith.constant 0.000000e+00 : f32
    %9 = vector.broadcast %cst_4 : f32 to vector<1x128xf32>
    %10 = vector.extract_strided_slice %8 {offsets = [0, 0], sizes = [15, 128], strides = [1, 1]} : vector<16x128xf32> to vector<15x128xf32>
    %11 = tpu.concatenate %9, %10 in 0 : vector<1x128xf32>, vector<15x128xf32> -> vector<16x128xf32>
    %12 = vector.extract_strided_slice %8 {offsets = [1, 0], sizes = [15, 128], strides = [1, 1]} : vector<16x128xf32> to vector<15x128xf32>
    %13 = tpu.concatenate %12, %9 in 0 : vector<15x128xf32>, vector<1x128xf32> -> vector<16x128xf32>
    %14 = arith.truncf %11 : vector<16x128xf32> to vector<16x128xbf16>
    %c0_5 = arith.constant 0 : index
    %c0_6 = arith.constant 0 : index
    %c0_7 = arith.constant 0 : index
    %15 = vector.load %arg3[%c0_5, %c0_6, %c0_7] : memref<3x128x128xbf16, #tpu.memory_space<vmem>>, vector<1x128x128xbf16>
    %16 = vector.shape_cast %15 : vector<1x128x128xbf16> to vector<128x128xbf16>
    %cst_8 = arith.constant dense<0.000000e+00> : vector<16x128xf32>
    %17 = tpu.matmul %14, %16, %cst_8 {dimension_numbers = #tpu.dot_dimension_numbers<[1], [0], [0], [1], [0, 0, 1, 1], [], []>} : vector<16x128xbf16>, vector<128x128xbf16>, vector<16x128xf32> -> vector<16x128xf32>
    %18 = arith.truncf %8 : vector<16x128xf32> to vector<16x128xbf16>
    %c1_9 = arith.constant 1 : index
    %c0_10 = arith.constant 0 : index
    %c0_11 = arith.constant 0 : index
    %19 = vector.load %arg3[%c1_9, %c0_10, %c0_11] : memref<3x128x128xbf16, #tpu.memory_space<vmem>>, vector<1x128x128xbf16>
    %20 = vector.shape_cast %19 : vector<1x128x128xbf16> to vector<128x128xbf16>
    %cst_12 = arith.constant dense<0.000000e+00> : vector<16x128xf32>
    %21 = tpu.matmul %18, %20, %cst_12 {dimension_numbers = #tpu.dot_dimension_numbers<[1], [0], [0], [1], [0, 0, 1, 1], [], []>} : vector<16x128xbf16>, vector<128x128xbf16>, vector<16x128xf32> -> vector<16x128xf32>
    %22 = arith.addf %17, %21 : vector<16x128xf32>
    %23 = arith.truncf %13 : vector<16x128xf32> to vector<16x128xbf16>
    %c2 = arith.constant 2 : index
    %c0_13 = arith.constant 0 : index
    %c0_14 = arith.constant 0 : index
    %24 = vector.load %arg3[%c2, %c0_13, %c0_14] : memref<3x128x128xbf16, #tpu.memory_space<vmem>>, vector<1x128x128xbf16>
    %25 = vector.shape_cast %24 : vector<1x128x128xbf16> to vector<128x128xbf16>
    %cst_15 = arith.constant dense<0.000000e+00> : vector<16x128xf32>
    %26 = tpu.matmul %23, %25, %cst_15 {dimension_numbers = #tpu.dot_dimension_numbers<[1], [0], [0], [1], [0, 0, 1, 1], [], []>} : vector<16x128xbf16>, vector<128x128xbf16>, vector<16x128xf32> -> vector<16x128xf32>
    %27 = arith.addf %22, %26 : vector<16x128xf32>
    %c0_16 = arith.constant 0 : index
    %c0_17 = arith.constant 0 : index
    %28 = vector.load %arg4[%c0_16, %c0_17] : memref<16x128xf32, #tpu.memory_space<vmem>>, vector<16x128xf32>
    tpu.vector_store %arg4[%c0_16, %c0_17], %27 {strides = array<i32>} : memref<16x128xf32, #tpu.memory_space<vmem>>, vector<16x128xf32>,
    %cst_18 = arith.constant dense<0.000000e+00> : vector<128xf32>
    %29 = vector.multi_reduction <add>, %27, %cst_18 [0] : vector<16x128xf32> to vector<128xf32>
    %30 = vector.shape_cast %29 : vector<128xf32> to vector<1x128xf32>
    %31 = arith.mulf %27, %27 : vector<16x128xf32>
    %cst_19 = arith.constant dense<0.000000e+00> : vector<128xf32>
    %32 = vector.multi_reduction <add>, %31, %cst_19 [0] : vector<16x128xf32> to vector<128xf32>
    %33 = vector.shape_cast %32 : vector<128xf32> to vector<1x128xf32>
    %34 = tpu.concatenate %30, %33 in 0 : vector<1x128xf32>, vector<1x128xf32> -> vector<2x128xf32>
    %35 = vector.shape_cast %34 : vector<2x128xf32> to vector<1x2x128xf32>
    %c0_20 = arith.constant 0 : index
    %c0_21 = arith.constant 0 : index
    %c0_22 = arith.constant 0 : index
    %36 = vector.load %arg5[%c0_20, %c0_21, %c0_22] : memref<1x2x128xf32, #tpu.memory_space<vmem>>, vector<1x2x128xf32>
    tpu.vector_store %arg5[%c0_20, %c0_21, %c0_22], %35 {strides = array<i32>} : memref<1x2x128xf32, #tpu.memory_space<vmem>>, vector<1x2x128xf32>,
    return
  }
  func.func @transform_0(%arg0: i32) -> (i32, i32) {
    %c0_i32 = arith.constant 0 : i32
    %c0_i32_0 = arith.constant 0 : i32
    return %arg0, %c0_i32 : i32, i32
  }
  func.func @transform_1(%arg0: i32) -> (i32, i32) {
    %c0_i32 = arith.constant 0 : i32
    %c0_i32_0 = arith.constant 0 : i32
    %c0_i32_1 = arith.constant 0 : i32
    return %c0_i32, %c0_i32_0 : i32, i32
  }
  func.func @transform_2(%arg0: i32) -> (i32, i32, i32) {
    %c0_i32 = arith.constant 0 : i32
    %c0_i32_0 = arith.constant 0 : i32
    %c0_i32_1 = arith.constant 0 : i32
    %c0_i32_2 = arith.constant 0 : i32
    return %c0_i32, %c0_i32_0, %c0_i32_1 : i32, i32, i32
  }
  func.func @transform_3(%arg0: i32) -> (i32, i32) {
    %c0_i32 = arith.constant 0 : i32
    %c0_i32_0 = arith.constant 0 : i32
    return %arg0, %c0_i32 : i32, i32
  }
  func.func @transform_4(%arg0: i32) -> (i32, i32, i32) {
    %c0_i32 = arith.constant 0 : i32
    %c0_i32_0 = arith.constant 0 : i32
    %c0_i32_1 = arith.constant 0 : i32
    return %arg0, %c0_i32, %c0_i32_0 : i32, i32, i32
  }
}

module attributes {stable_mosaic.version = 11 : i64} {
  func.func @conv2_kernel(%arg0: i32, %arg1: memref<16x128xf32, #tpu.memory_space<vmem>>, %arg2: memref<16x128xf32, #tpu.memory_space<vmem>>, %arg3: memref<2x128xf32, #tpu.memory_space<vmem>>, %arg4: memref<3x128x128xbf16, #tpu.memory_space<vmem>>, %arg5: memref<16x128xf32, #tpu.memory_space<vmem>>) attributes {dimension_semantics = [#tpu.dimension_semantics<parallel>], iteration_bounds = array<i64: 2>, scalar_prefetch = 0 : i64, scratch_operands = 0 : i64, tpu.core_type = #tpu.core_type<tc>, window_params = [{transform_indices = @transform_0, window_bounds = array<i64: 16, 128>}, {transform_indices = @transform_1, window_bounds = array<i64: 16, 128>}, {pipeline_mode = #tpu.pipeline_mode<synchronous>, transform_indices = @transform_2, window_bounds = array<i64: 2, 128>}, {pipeline_mode = #tpu.pipeline_mode<synchronous>, transform_indices = @transform_3, window_bounds = array<i64: 3, 128, 128>}, {transform_indices = @transform_4, window_bounds = array<i64: 16, 128>}]} {
    %c0 = arith.constant 0 : index
    %c0_0 = arith.constant 0 : index
    %0 = vector.load %arg1[%c0, %c0_0] : memref<16x128xf32, #tpu.memory_space<vmem>>, vector<16x128xf32>
    %c0_1 = arith.constant 0 : index
    %c0_2 = arith.constant 0 : index
    %1 = vector.load %arg3[%c0_1, %c0_2] : memref<2x128xf32, #tpu.memory_space<vmem>>, vector<1x128xf32>
    %2 = vector.broadcast %1 : vector<1x128xf32> to vector<16x128xf32>
    %3 = arith.mulf %0, %2 : vector<16x128xf32>
    %c1 = arith.constant 1 : index
    %c0_3 = arith.constant 0 : index
    %4 = vector.load %arg3[%c1, %c0_3] : memref<2x128xf32, #tpu.memory_space<vmem>>, vector<1x128xf32>
    %5 = vector.broadcast %4 : vector<1x128xf32> to vector<16x128xf32>
    %6 = arith.addf %3, %5 : vector<16x128xf32>
    %cst = arith.constant 0.000000e+00 : f32
    %7 = vector.broadcast %cst : f32 to vector<16x128xf32>
    %8 = arith.maximumf %6, %7 : vector<16x128xf32>
    %cst_4 = arith.constant 0.000000e+00 : f32
    %9 = vector.broadcast %cst_4 : f32 to vector<1x128xf32>
    %10 = vector.extract_strided_slice %8 {offsets = [0, 0], sizes = [15, 128], strides = [1, 1]} : vector<16x128xf32> to vector<15x128xf32>
    %11 = tpu.concatenate %9, %10 in 0 : vector<1x128xf32>, vector<15x128xf32> -> vector<16x128xf32>
    %12 = vector.extract_strided_slice %8 {offsets = [1, 0], sizes = [15, 128], strides = [1, 1]} : vector<16x128xf32> to vector<15x128xf32>
    %13 = tpu.concatenate %12, %9 in 0 : vector<15x128xf32>, vector<1x128xf32> -> vector<16x128xf32>
    %14 = arith.truncf %11 : vector<16x128xf32> to vector<16x128xbf16>
    %c0_5 = arith.constant 0 : index
    %c0_6 = arith.constant 0 : index
    %c0_7 = arith.constant 0 : index
    %15 = vector.load %arg4[%c0_5, %c0_6, %c0_7] : memref<3x128x128xbf16, #tpu.memory_space<vmem>>, vector<1x128x128xbf16>
    %16 = vector.shape_cast %15 : vector<1x128x128xbf16> to vector<128x128xbf16>
    %cst_8 = arith.constant dense<0.000000e+00> : vector<16x128xf32>
    %17 = tpu.matmul %14, %16, %cst_8 {dimension_numbers = #tpu.dot_dimension_numbers<[1], [0], [0], [1], [0, 0, 1, 1], [], []>} : vector<16x128xbf16>, vector<128x128xbf16>, vector<16x128xf32> -> vector<16x128xf32>
    %18 = arith.truncf %8 : vector<16x128xf32> to vector<16x128xbf16>
    %c1_9 = arith.constant 1 : index
    %c0_10 = arith.constant 0 : index
    %c0_11 = arith.constant 0 : index
    %19 = vector.load %arg4[%c1_9, %c0_10, %c0_11] : memref<3x128x128xbf16, #tpu.memory_space<vmem>>, vector<1x128x128xbf16>
    %20 = vector.shape_cast %19 : vector<1x128x128xbf16> to vector<128x128xbf16>
    %cst_12 = arith.constant dense<0.000000e+00> : vector<16x128xf32>
    %21 = tpu.matmul %18, %20, %cst_12 {dimension_numbers = #tpu.dot_dimension_numbers<[1], [0], [0], [1], [0, 0, 1, 1], [], []>} : vector<16x128xbf16>, vector<128x128xbf16>, vector<16x128xf32> -> vector<16x128xf32>
    %22 = arith.addf %17, %21 : vector<16x128xf32>
    %23 = arith.truncf %13 : vector<16x128xf32> to vector<16x128xbf16>
    %c2 = arith.constant 2 : index
    %c0_13 = arith.constant 0 : index
    %c0_14 = arith.constant 0 : index
    %24 = vector.load %arg4[%c2, %c0_13, %c0_14] : memref<3x128x128xbf16, #tpu.memory_space<vmem>>, vector<1x128x128xbf16>
    %25 = vector.shape_cast %24 : vector<1x128x128xbf16> to vector<128x128xbf16>
    %cst_15 = arith.constant dense<0.000000e+00> : vector<16x128xf32>
    %26 = tpu.matmul %23, %25, %cst_15 {dimension_numbers = #tpu.dot_dimension_numbers<[1], [0], [0], [1], [0, 0, 1, 1], [], []>} : vector<16x128xbf16>, vector<128x128xbf16>, vector<16x128xf32> -> vector<16x128xf32>
    %27 = arith.addf %22, %26 : vector<16x128xf32>
    %c0_16 = arith.constant 0 : index
    %c0_17 = arith.constant 0 : index
    %28 = vector.load %arg2[%c0_16, %c0_17] : memref<16x128xf32, #tpu.memory_space<vmem>>, vector<16x128xf32>
    %29 = arith.addf %27, %28 : vector<16x128xf32>
    %c0_18 = arith.constant 0 : index
    %c0_19 = arith.constant 0 : index
    %30 = vector.load %arg5[%c0_18, %c0_19] : memref<16x128xf32, #tpu.memory_space<vmem>>, vector<16x128xf32>
    tpu.vector_store %arg5[%c0_18, %c0_19], %29 {strides = array<i32>} : memref<16x128xf32, #tpu.memory_space<vmem>>, vector<16x128xf32>,
    return
  }
  func.func @transform_0(%arg0: i32) -> (i32, i32) {
    %c0_i32 = arith.constant 0 : i32
    %c0_i32_0 = arith.constant 0 : i32
    return %arg0, %c0_i32 : i32, i32
  }
  func.func @transform_1(%arg0: i32) -> (i32, i32) {
    %c0_i32 = arith.constant 0 : i32
    %c0_i32_0 = arith.constant 0 : i32
    return %arg0, %c0_i32 : i32, i32
  }
  func.func @transform_2(%arg0: i32) -> (i32, i32) {
    %c0_i32 = arith.constant 0 : i32
    %c0_i32_0 = arith.constant 0 : i32
    %c0_i32_1 = arith.constant 0 : i32
    return %c0_i32, %c0_i32_0 : i32, i32
  }
  func.func @transform_3(%arg0: i32) -> (i32, i32, i32) {
    %c0_i32 = arith.constant 0 : i32
    %c0_i32_0 = arith.constant 0 : i32
    %c0_i32_1 = arith.constant 0 : i32
    %c0_i32_2 = arith.constant 0 : i32
    return %c0_i32, %c0_i32_0, %c0_i32_1 : i32, i32, i32
  }
  func.func @transform_4(%arg0: i32) -> (i32, i32) {
    %c0_i32 = arith.constant 0 : i32
    %c0_i32_0 = arith.constant 0 : i32
    return %arg0, %c0_i32 : i32, i32
  }
}

</mosaic_0001>

<bundles_post_ra>
// kernel: squeeze.40
= control target key start
LH: loop header
LB: loop body
LE: loop exit
PB: predicated region body
PF: predicated region fallthrough
CT: control target
= control target key end

     0   :  { %s130_s8 = smov 120   ;;  %s131_s9 = smov 88   ;;  %vm7_vm0 = vcmask 64512   ;;  %s221_s0 = inlined_call_operand.vmem [shape: f32[128], index: 0, kind: input, shape index: {}]   ;;  %s222_s1 = inlined_call_operand.vmem [shape: f32[16,8], index: 1, kind: output, shape index: {}]  }
   0x1   :  { %v4_v0 = vld [vmem:[%s221_s0] sm:$0x1]  ;;  %s129_s0 = smov 104   ;;  %s132_s10 = smov 96  }
   0x2   :  { %5 = vst [vmem:[#allocation0] sm:$0x1] %v4_v0  ;;  %s133_s11 = smov 112   ;;  %s134_s12 = smov 80  }
   0x3   :  { %s135_s13 = smov 64   ;;  %s136_s14 = smov 72  }
   0x4   :  { %s137_s15 = smov 56   ;;  %s138_s16 = smov 40  }
   0x5   :  { %s139_s17 = smov 48   ;;  %s140_s18 = smov 32  }
   0x6   :  { %s141_s19 = smov 16   ;;  %s142_s20 = smov 24  }
   0x7   :  { %s143_s21 = smov 8  }
   0x9   :  { %v21_v1 = vld [vmem:[#allocation0] sm:$0x1]  }
   0xa   :  { %v9_v2 = vld [vmem:[#allocation0] sm:$0x1]   ;;  %22 = vrot.lane.b32.xlu1 %v21_v1, %s129_s0 }
   0xb   :  { %10 = vrot.lane.b32.xlu0 %v9_v2, %s130_s8  ;;  %v33_v3 = vld [vmem:[#allocation0] sm:$0x1]  }
   0xc   :  { %34 = vrot.lane.b32.xlu2 %v33_v3, %s131_s9  ;;  %v27_v4 = vld [vmem:[#allocation0] sm:$0x1]  }
   0xd   :  { %v15_v5 = vld [vmem:[#allocation0] sm:$0x1]  }
   0xe   :  { %v39_v6 = vld [vmem:[#allocation0] sm:$0x1]  }
   0xf   :  { %v51_v7 = vld [vmem:[#allocation0] sm:$0x1]  }
  0x10   :  { %v45_v8 = vld [vmem:[#allocation0] sm:$0x1]  }
  0x11   :  { %v57_v9 = vld [vmem:[#allocation0] sm:$0x1]  }
  0x12   :  { %28 = vrot.lane.b32.xlu1 %v27_v4, %s132_s10  ;;  %v69_v10 = vld [vmem:[#allocation0] sm:$0x1]  }
  0x13   :  { %16 = vrot.lane.b32.xlu0 %v15_v5, %s133_s11  ;;  %v63_v11 = vld [vmem:[#allocation0] sm:$0x1]  }
  0x14   :  { %40 = vrot.lane.b32.xlu2 %v39_v6, %s134_s12  ;;  %v75_v12 = vld [vmem:[#allocation0] sm:$0x1]  }
  0x15   :  { %v87_v13 = vld [vmem:[#allocation0] sm:$0x1]  }
  0x16   :  { %v81_v14 = vld [vmem:[#allocation0] sm:$0x1]  }
  0x17   :  { %v93_v15 = vld [vmem:[#allocation0] sm:$0x1]  }
  0x18   :  { %v6_v21 = vld [vmem:[#allocation0] sm:$0x1]  }
  0x19   :  { %8 = vst.msk [vmem:[%s222_s1] sm:$0x1] %vm7_vm0, %v6_v21  }
  0x1a   :  { %52 = vrot.lane.b32.xlu1 %v51_v7, %s135_s13 }
  0x1b   :  { %46 = vrot.lane.b32.xlu0 %v45_v8, %s136_s14 }
  0x1c   :  { %58 = vrot.lane.b32.xlu2 %v57_v9, %s137_s15 }
  0x22   :  { %70 = vrot.lane.b32.xlu1 %v69_v10, %s138_s16 }
  0x23   :  { %64 = vrot.lane.b32.xlu0 %v63_v11, %s139_s17 }
  0x24   :  { %76 = vrot.lane.b32.xlu2 %v75_v12, %s140_s18 }
  0x2a   :  { %88 = vrot.lane.b32.xlu1 %v87_v13, %s141_s19 }
  0x2b   :  { %82 = vrot.lane.b32.xlu0 %v81_v14, %s142_s20 }
  0x2c   :  { %94 = vrot.lane.b32.xlu2 %v93_v15, %s143_s21 }
  0x66   :  { %v35_v16 = vpop.permute.xlu2 %34  }
  0x67   :  { %103 = vst.msk [vmem:[%s222_s1 + $0x5] sm:$0x1] %vm7_vm0, %v35_v16  }
  0x6e   :  { %v41_v17 = vpop.permute.xlu2 %40  }
  0x6f   :  { %104 = vst.msk [vmem:[%s222_s1 + $0x6] sm:$0x1] %vm7_vm0, %v41_v17  }
  0x76   :  { %v59_v18 = vpop.permute.xlu2 %58  }
  0x77   :  { %107 = vst.msk [vmem:[%s222_s1 + $0x9] sm:$0x1] %vm7_vm0, %v59_v18  }
  0x7c   :  { %v23_v19 = vpop.permute.xlu1 %22  }
  0x7d   :  { %v11_v20 = vpop.permute.xlu0 %10   ;;  %101 = vst.msk [vmem:[%s222_s1 + $0x3] sm:$0x1] %vm7_vm0, %v23_v19  }
  0x7e   :  { %99 = vst.msk [vmem:[%s222_s1 + $0x1] sm:$0x1] %vm7_vm0, %v11_v20   ;;  %v77_v22 = vpop.permute.xlu2 %76  }
  0x7f   :  { %110 = vst.msk [vmem:[%s222_s1 + $0xc] sm:$0x1] %vm7_vm0, %v77_v22  }
  0x84   :  { %v29_v23 = vpop.permute.xlu1 %28  }
  0x85   :  { %v17_v24 = vpop.permute.xlu0 %16   ;;  %102 = vst.msk [vmem:[%s222_s1 + $0x4] sm:$0x1] %vm7_vm0, %v29_v23  }
  0x86   :  { %100 = vst.msk [vmem:[%s222_s1 + $0x2] sm:$0x1] %vm7_vm0, %v17_v24   ;;  %v95_v25 = vpop.permute.xlu2 %94  }
  0x87   :  { %113 = vst.msk [vmem:[%s222_s1 + $0xf] sm:$0x1] %vm7_vm0, %v95_v25  }
  0x8c   :  { %v53_v26 = vpop.permute.xlu1 %52  }
  0x8d   :  { %v47_v27 = vpop.permute.xlu0 %46   ;;  %106 = vst.msk [vmem:[%s222_s1 + $0x8] sm:$0x1] %vm7_vm0, %v53_v26  }
  0x8e   :  { %105 = vst.msk [vmem:[%s222_s1 + $0x7] sm:$0x1] %vm7_vm0, %v47_v27  }
  0x94   :  { %v71_v28 = vpop.permute.xlu1 %70  }
  0x95   :  { %v65_v29 = vpop.permute.xlu0 %64   ;;  %109 = vst.msk [vmem:[%s222_s1 + $0xb] sm:$0x1] %vm7_vm0, %v71_v28  }
  0x96   :  { %108 = vst.msk [vmem:[%s222_s1 + $0xa] sm:$0x1] %vm7_vm0, %v65_v29  }
  0x9c   :  { %v89_v30 = vpop.permute.xlu1 %88  }
  0x9d   :  { %v83_v31 = vpop.permute.xlu0 %82   ;;  %112 = vst.msk [vmem:[%s222_s1 + $0xe] sm:$0x1] %vm7_vm0, %v89_v30  }
  0x9e   :  { %111 = vst.msk [vmem:[%s222_s1 + $0xd] sm:$0x1] %vm7_vm0, %v83_v31  }

// kernel: tile.23
= control target key start
LH: loop header
LB: loop body
LE: loop exit
PB: predicated region body
PF: predicated region fallthrough
CT: control target
= control target key end

     0   :  { %s28_s0 = inlined_call_operand.vmem [shape: f32[8], index: 0, kind: input, shape index: {}]   ;;  %s29_s1 = inlined_call_operand.vmem [shape: f32[16,8], index: 1, kind: output, shape index: {}]  }
   0x1   :  { %v4_v0 = vld [vmem:[%s28_s0] ss:$0 sm:$0xff] }
   0x2   :  { %5 = vst [vmem:[%s29_s1] sm:$0xff] %v4_v0 }
   0x3   :  { %8 = vst [vmem:[%s29_s1 + $0x8] sm:$0xff] %v4_v0 }

// kernel: tile.28
= control target key start
LH: loop header
LB: loop body
LE: loop exit
PB: predicated region body
PF: predicated region fallthrough
CT: control target
= control target key end

     0   :  { %s131_s10 = smov 120   ;;  %s132_s11 = smov 104   ;;  %vm3_vm0 = vcmask 64512   ;;  %vm9_vm1 = vcmask 1048512   ;;  %vm15_vm2 = vcmask 982912   ;;  %vm21_vm3 = vcmask 917312   ;;  %s207_s0 = inlined_call_operand.vmem [shape: f32[16,8], index: 0, kind: input, shape index: {}]   ;;  %s208_s1 = inlined_call_operand.vmem [shape: f32[1,128], index: 1, kind: output, shape index: {}]  }
   0x1   :  { %v101_v0 = vld [vmem:[%s207_s0 + $0xf] sm:$0x1]   ;;  %v103_v1 = vld [vmem:[%s207_s0 + $0xd] sm:$0x1]   ;;  %v105_v2 = vld [vmem:[%s207_s0 + $0xb] sm:$0x1]  }
   0x2   :  { %7 = vrot.lane.b32.xlu0 %v101_v0, %s131_s10  ;;  %19 = vrot.lane.b32.xlu1 %v103_v1, %s132_s11  ;;  %s133_s14 = smov 88   ;;  %v102_v3 = vld [vmem:[%s207_s0 + $0xe] sm:$0x1]   ;;  %v104_v4 = vld [vmem:[%s207_s0 + $0xc] sm:$0x1]   ;;  %s134_s19 = smov 112  }
   0x3   :  { %31 = vrot.lane.b32.xlu2 %v105_v2, %s133_s14  ;;  %s135_s20 = smov 96   ;;  %v106_v5 = vld [vmem:[%s207_s0 + $0xa] sm:$0x1]   ;;  %s136_s23 = smov 80   ;;  %v107_v6 = vld [vmem:[%s207_s0 + $0x9] sm:$0x1]  }
   0x4   :  { %v108_v7 = vld [vmem:[%s207_s0 + $0x8] sm:$0x1]   ;;  %s137_s28 = smov 72   ;;  %s138_s29 = smov 64   ;;  %v109_v8 = vld [vmem:[%s207_s0 + $0x7] sm:$0x1]  }
   0x5   :  { %s139_s3 = smov 56   ;;  %v110_v9 = vld [vmem:[%s207_s0 + $0x6] sm:$0x1]   ;;  %v111_v10 = vld [vmem:[%s207_s0 + $0x5] sm:$0x1]   ;;  %s140_s8 = smov 48  }
   0x6   :  { %s141_s9 = smov 40   ;;  %v112_v11 = vld [vmem:[%s207_s0 + $0x4] sm:$0x1]   ;;  %s142_s12 = smov 32   ;;  %v113_v12 = vld [vmem:[%s207_s0 + $0x3] sm:$0x1]  }
   0x7   :  { %v114_v13 = vld [vmem:[%s207_s0 + $0x2] sm:$0x1]   ;;  %s143_s17 = smov 24   ;;  %s144_s18 = smov 16   ;;  %v115_v14 = vld [vmem:[%s207_s0 + $0x1] sm:$0x1]  }
   0x8   :  { %s145_s21 = smov 8   ;;  %v2_v15 = vld [vmem:[%s207_s0] sm:$0x1]   ;;  %vm27_vm4 = vcmask 851712   ;;  %vm33_vm5 = vcmask 786112   ;;  %vm39_vm6 = vcmask 720512  }
   0x9   :  { %4 = vst.msk [vmem:[#allocation0] sm:$0x1] %vm3_vm0, %v2_v15   ;;  %vm45_vm7 = vcmask 654912   ;;  %vm51_vm8 = vcmask 589312   ;;  %vm57_vm9 = vcmask 523712   ;;  %vm63_vm10 = vcmask 458112  }
   0xa   :  { %13 = vrot.lane.b32.xlu0 %v102_v3, %s134_s19  ;;  %25 = vrot.lane.b32.xlu1 %v104_v4, %s135_s20  ;;  %vm69_vm11 = vcmask 392512   ;;  %vm75_vm12 = vcmask 326912   ;;  %vm81_vm13 = vcmask 261312   ;;  %vm87_vm14 = vcmask 195712  }
   0xb   :  { %37 = vrot.lane.b32.xlu2 %v106_v5, %s136_s23  ;;  %vm93_vm15 = vcmask 130112  }
  0x12   :  { %43 = vrot.lane.b32.xlu0 %v107_v6, %s137_s28  ;;  %49 = vrot.lane.b32.xlu1 %v108_v7, %s138_s29 }
  0x13   :  { %55 = vrot.lane.b32.xlu2 %v109_v8, %s139_s3 }
  0x1a   :  { %61 = vrot.lane.b32.xlu0 %v110_v9, %s140_s8  ;;  %67 = vrot.lane.b32.xlu1 %v111_v10, %s141_s9 }
  0x1b   :  { %73 = vrot.lane.b32.xlu2 %v112_v11, %s142_s12 }
  0x22   :  { %79 = vrot.lane.b32.xlu0 %v113_v12, %s143_s17  ;;  %85 = vrot.lane.b32.xlu1 %v114_v13, %s144_s18 }
  0x23   :  { %91 = vrot.lane.b32.xlu2 %v115_v14, %s145_s21 }
  0x5d   :  { %v32_v16 = vpop.permute.xlu2 %31  }
  0x65   :  { %v38_v17 = vpop.permute.xlu2 %37  }
  0x6d   :  { %v56_v18 = vpop.permute.xlu2 %55  }
  0x74   :  { %v8_v19 = vpop.permute.xlu0 %7   ;;  %v20_v20 = vpop.permute.xlu1 %19  }
  0x75   :  { %10 = vst.msk [vmem:[#allocation0] sm:$0x1] %vm9_vm1, %v8_v19   ;;  %v74_v21 = vpop.permute.xlu2 %73  }
  0x7c   :  { %v14_v22 = vpop.permute.xlu0 %13   ;;  %v26_v23 = vpop.permute.xlu1 %25  }
  0x7d   :  { %16 = vst.msk [vmem:[#allocation0] sm:$0x1] %vm15_vm2, %v14_v22   ;;  %v92_v24 = vpop.permute.xlu2 %91  }
  0x7e   :  { %22 = vst.msk [vmem:[#allocation0] sm:$0x1] %vm21_vm3, %v20_v20  }
  0x7f   :  { %28 = vst.msk [vmem:[#allocation0] sm:$0x1] %vm27_vm4, %v26_v23  }
  0x80   :  { %34 = vst.msk [vmem:[#allocation0] sm:$0x1] %vm33_vm5, %v32_v16  }
  0x81   :  { %40 = vst.msk [vmem:[#allocation0] sm:$0x1] %vm39_vm6, %v38_v17  }
  0x84   :  { %v44_v25 = vpop.permute.xlu0 %43   ;;  %v50_v26 = vpop.permute.xlu1 %49  }
  0x85   :  { %46 = vst.msk [vmem:[#allocation0] sm:$0x1] %vm45_vm7, %v44_v25  }
  0x86   :  { %52 = vst.msk [vmem:[#allocation0] sm:$0x1] %vm51_vm8, %v50_v26  }
  0x87   :  { %58 = vst.msk [vmem:[#allocation0] sm:$0x1] %vm57_vm9, %v56_v18  }
  0x8c   :  { %v62_v27 = vpop.permute.xlu0 %61   ;;  %v68_v28 = vpop.permute.xlu1 %67  }
  0x8d   :  { %64 = vst.msk [vmem:[#allocation0] sm:$0x1] %vm63_vm10, %v62_v27  }
  0x8e   :  { %70 = vst.msk [vmem:[#allocation0] sm:$0x1] %vm69_vm11, %v68_v28  }
  0x8f   :  { %76 = vst.msk [vmem:[#allocation0] sm:$0x1] %vm75_vm12, %v74_v21  }
  0x94   :  { %v80_v29 = vpop.permute.xlu0 %79   ;;  %v86_v30 = vpop.permute.xlu1 %85  }
  0x95   :  { %82 = vst.msk [vmem:[#allocation0] sm:$0x1] %vm81_vm13, %v80_v29  }
  0x96   :  { %88 = vst.msk [vmem:[#allocation0] sm:$0x1] %vm87_vm14, %v86_v30  }
  0x97   :  { %94 = vst.msk [vmem:[#allocation0] sm:$0x1] %vm93_vm15, %v92_v24  }
  0x9e   :  { %v97_v31 = vld [vmem:[#allocation0] sm:$0x1] }
  0x9f   :  { %100 = vst [vmem:[%s208_s1] sm:$0x1] %v97_v31 }

// kernel: preact_basic_block.3
= control target key start
LH: loop header
LB: loop body
LE: loop exit
PB: predicated region body
PF: predicated region fallthrough
CT: control target
= control target key end

     0   :  { %s227_s6 = smov 0   ;;  %s244_s0 = inlined_call_operand.vmem [shape: f32[32,128], index: 0, kind: input, shape index: {}]   ;;  %s245_s1 = inlined_call_operand.vmem [shape: f32[2,2,128], index: 1, kind: output, shape index: {}]  }
   0x1 LB: > { %s191_s7 = sadd.s32 4294967295, %s215_s6   ;;  %p195_p0 = scmp.ge.s32.totalorder %s215_s6, 1  ;;  %s215_s6 = sphi %s227_s6, %s11_s6  }
   0x2   : > { %p88_p1 = scmp.lt.s32.totalorder %s215_s6, 3 }
   0x4   : > { %p89_p2 = pnand %p195_p0, %p88_p1 }
   0x5   : > { %s196_s8 = sshll.u32 (!%p89_p2), %s191_s7, 1  ;;  %p113_p4 = scmp.lt.s32.totalorder (!%p89_p2), %s191_s7, 1 }
   0x6   : > { %92 = sbr.rel (%p89_p2) target bundleno = 33 (0x21), region = 24  ;;  %p108_p3 = scmp.lt.s32.totalorder (!%p89_p2), %s196_s8, 3 }
   0xb   : > { %s247_s8 = smov (!%p108_p3, %s196_s8), 3  ;;  %s249_s7 = smov (!%p113_p4, %s191_s7), 1  ;;  %vm135_vm0 = vcmask 1040384  }
   0xc   : > { %s197_s9 = sshll.u32 %s247_s8, 3  ;;  %s198_s13 = sshll.u32 %s249_s7, 1 }
   0xd   : > { %s111_s12 = scalar_lea.vmem %s244_s0, %s197_s9  ;;  %s116_s16 = scalar_lea.vmem %s245_s1, %s198_s13 }
   0xe   : > { %v117_v0 = vld [vmem:[%s111_s12] sm:$0xff]  ;;  %v118_v1 = vld [vmem:[%s111_s12 + $0x8] sm:$0xff] }
   0xf   : > { %v119_v2 = vadd.f32 %v118_v1, %v117_v0  ;;  %v126_v3 = vmul.f32 %v117_v0, %v117_v0  ;;  %v127_v4 = vmul.f32 %v118_v1, %v118_v1 }
  0x11   : > { %v120_v5 = vrot.slane %v119_v2, 4  ;;  %v128_v6 = vadd.f32 %v127_v4, %v126_v3 }
  0x13   : > { %v121_v7 = vadd.f32 %v120_v5, %v119_v2  ;;  %v129_v8 = vrot.slane %v128_v6, 4 }
  0x15   : > { %v122_v9 = vrot.slane %v121_v7, 2  ;;  %v130_v10 = vadd.f32 %v129_v8, %v128_v6 }
  0x17   : > { %v123_v11 = vadd.f32 %v122_v9, %v121_v7  ;;  %v131_v12 = vrot.slane %v130_v10, 2 }
  0x19   : > { %v124_v13 = vrot.slane %v123_v11, 1  ;;  %v132_v14 = vadd.f32 %v131_v12, %v130_v10 }
  0x1b   : > { %v125_v15 = vadd.f32 %v124_v13, %v123_v11  ;;  %v133_v16 = vrot.slane %v132_v14, 1 }
  0x1d   : > { %v134_v17 = vadd.f32 %v133_v16, %v132_v14 }
  0x1f   : > { %v136_v18 = vsel %vm135_vm0, %v125_v15, %v134_v17 }
  0x20   : > { %137 = vst [vmem:[%s116_s16] sm:$0x3] %v136_v18 }
  0x21 PF: > { %s11_s6 = sadd.s32 1, %s215_s6  }
  0x22   : > { %p8_p5 = scmp.ge.s32.totalorder %s11_s6, 4  }
  0x24   :  { %10 = sbr.rel (!%p8_p5) target bundleno = 1 (0x1), region = 54 }

// kernel: preact_basic_block.4
= control target key start
LH: loop header
LB: loop body
LE: loop exit
PB: predicated region body
PF: predicated region fallthrough
CT: control target
= control target key end

     0   :  { %s804_s15 = smov 0   ;;  %s919_s0 = inlined_call_operand.vmem [shape: f32[32,128], index: 0, kind: input, shape index: {}]   ;;  %s920_s1 = inlined_call_operand.vmem [shape: f32[2,128], index: 1, kind: input, shape index: {}]   ;;  %s921_s2 = inlined_call_operand.vmem [shape: bf16[3,128,128], index: 2, kind: input, shape index: {}]   ;;  %s922_s3 = inlined_call_operand.vmem [shape: f32[32,128], index: 3, kind: output, shape index: {0}]   ;;  %s923_s4 = inlined_call_operand.vmem [shape: f32[2,2,128], index: 4, kind: output, shape index: {1}]  }
   0x1 LB: > { %s810_s16 = sadd.s32 4294967295, %s776_s15   ;;  %p592_p0 = scmp.ge.s32.totalorder %s776_s15, 1  ;;  %s776_s15 = sphi %s804_s15, %s15_s15  }
   0x2   : > { %p166_p1 = scmp.lt.s32.totalorder %s776_s15, 3 }
   0x4   : > { %p167_p2 = pnand %p592_p0, %p166_p1 }
   0x5   : > { %s593_s23 = sshll.u32 (!%p167_p2), %s810_s16, 1  ;;  %p208_p4 = scmp.lt.s32.totalorder (!%p167_p2), %s810_s16, 1 }
   0x6   : > { %170 = sbr.rel (%p167_p2) target bundleno = 205 (0xcd), region = 32  ;;  %p197_p3 = scmp.lt.s32.totalorder (!%p167_p2), %s593_s23, 3 }
   0xb   : > { %v750_v0 = vld [vmem:[%s921_s2 + $0x78] sm:$0xff]  ;;  %v749_v3 = vld [vmem:[%s921_s2 + $0x70] sm:$0xff]  ;;  %s925_s23 = smov (!%p197_p3, %s593_s23), 3  ;;  %v748_v6 = vld [vmem:[%s921_s2 + $0x68] sm:$0xff]  ;;  %vm226_vm0 = vcmask 1040384   ;;  %vm233_vm1 = vcmask 1046528  }
   0xc   : > { %v742_v1 = vld [vmem:[%s921_s2 + $0x38] sm:$0xff]  ;;  %323 = vmatpush.bf16.msra.mxu0 %v750_v0  ;;  %v741_v4 = vld [vmem:[%s921_s2 + $0x30] sm:$0xff]  ;;  %s594_s30 = sshll.u32 %s925_s23, 3  ;;  %v740_v7 = vld [vmem:[%s921_s2 + $0x28] sm:$0xff]  ;;  %vm778_vm3 = vmmov 1   ;;  %s927_s16 = smov (!%p208_p4, %s810_s16), 1 }
   0xd   : > { %v758_v2 = vld [vmem:[%s921_s2 + $0xb8] sm:$0xff]  ;;  %385 = vmatpush.bf16.msra.mxu1 %v742_v1  ;;  %v757_v5 = vld [vmem:[%s921_s2 + $0xb0] sm:$0xff]  ;;  %s200_s11 = scalar_lea.vmem %s919_s0, %s594_s30  ;;  %v756_v8 = vld [vmem:[%s921_s2 + $0xa8] sm:$0xff]  ;;  %s206_s6 = scalar_lea.vmem %s922_s3, %s594_s30 }
   0xe   : > { %465 = vmatpush.bf16.msra.mxu2 %v758_v2  ;;  %v212_v9 = vld [vmem:[%s200_s11] sm:$0xff]  ;;  %v213_v10 = vld [vmem:[%s200_s11 + $0x8] sm:$0xff]  ;;  %v746_v18 = vld [vmem:[%s921_s2 + $0x58] sm:$0xff]  ;;  %s597_s23 = sshll.u32 %s927_s16, 1 }
   0xf   : > { %v768_v11 = vld [vmem:[%s920_s1] ss:$0 sm:$0xff]  ;;  %v769_v14 = vld [vmem:[%s920_s1 + $0x1] ss:$0 sm:$0xff]  ;;  %v738_v19 = vld [vmem:[%s921_s2 + $0x18] sm:$0xff]  ;;  %s211_s8 = scalar_lea.vmem %s923_s4, %s597_s23 }
  0x10   : > { %324 = vmatpush.bf16.msra.mxu0 %v749_v3  ;;  %v747_v12 = vld [vmem:[%s921_s2 + $0x60] sm:$0xff]  ;;  %v216_v16 = vmul.f32 %v768_v11, %v212_v9  ;;  %v217_v17 = vmul.f32 %v768_v11, %v213_v10  ;;  %v754_v22 = vld [vmem:[%s921_s2 + $0x98] sm:$0xff]  ;;  %v745_v23 = vld [vmem:[%s921_s2 + $0x50] sm:$0xff] }
  0x11   : > { %386 = vmatpush.bf16.msra.mxu1 %v741_v4  ;;  %v739_v13 = vld [vmem:[%s921_s2 + $0x20] sm:$0xff]  ;;  %v737_v24 = vld [vmem:[%s921_s2 + $0x10] sm:$0xff]  ;;  %v744_v28 = vld [vmem:[%s921_s2 + $0x48] sm:$0xff] }
  0x12   : > { %466 = vmatpush.bf16.msra.mxu2 %v757_v5  ;;  %v755_v15 = vld [vmem:[%s921_s2 + $0xa0] sm:$0xff]  ;;  %v220_v20 = vadd.f32 %v769_v14, %v216_v16  ;;  %v221_v21 = vadd.f32 %v769_v14, %v217_v17  ;;  %v753_v27 = vld [vmem:[%s921_s2 + $0x90] sm:$0xff]  ;;  %v736_v29 = vld [vmem:[%s921_s2 + $0x8] sm:$0xff] }
  0x13   : > { %v752_v32 = vld [vmem:[%s921_s2 + $0x88] sm:$0xff]  ;;  %v743_v35 = vld [vmem:[%s921_s2 + $0x40] sm:$0xff]  ;;  %vm678_vm2 = vmneg %vm226_vm0 }
  0x14   : > { %325 = vmatpush.bf16.msra.mxu0 %v748_v6  ;;  %v222_v25 = vmax.f32 %v220_v20, 0.0  ;;  %v223_v26 = vmax.f32 %v221_v21, 0.0  ;;  %v735_v36 = vld [vmem:[%s921_s2] sm:$0xff]  ;;  %vm679_vm4 = vmpackc.low %vm778_vm3, %vm678_vm2 }
  0x15   : > { %387 = vmatpush.bf16.msra.mxu1 %v740_v7  ;;  %v751_v38 = vld [vmem:[%s921_s2 + $0x80] sm:$0xff]  ;;  %vm730_vm5 = vmpackc.low %vm233_vm1, %vm778_vm3 }
  0x16   : > { %467 = vmatpush.bf16.msra.mxu2 %v756_v8  ;;  %v227_v30 = vrot.slane %v222_v25, 7  ;;  %v228_v31 = vrot.slane %v223_v26, 7  ;;  %v234_v33 = vrot.slane %v222_v25, 1  ;;  %v235_v34 = vrot.slane %v223_v26, 1 }
  0x17   : > { %v257_v40 = vpack.c.bf16 %v223_v26, %v222_v25 }
  0x18   : > { %326 = vmatpush.bf16.msra.mxu0 %v747_v12  ;;  %v229_v37 = vsel %vm226_vm0, %v227_v30, %v228_v31  ;;  %v236_v39 = vsel %vm233_vm1, %v234_v33, %v235_v34 }
  0x19   : > { %388 = vmatpush.bf16.msra.mxu1 %v739_v13  ;;  %v680_v41 = vpack.c.bf16 %v229_v37, %v227_v30  ;;  %v731_v42 = vpack.c.bf16 %v235_v34, %v236_v39 }
  0x1a   : > { %468 = vmatpush.bf16.msra.mxu2 %v755_v15 }
  0x1c   : > { %327 = vmatpush.bf16.msra.mxu0 %v746_v18 }
  0x1d   : > { %389 = vmatpush.bf16.msra.mxu1 %v738_v19 }
  0x1e   : > { %469 = vmatpush.bf16.msra.mxu2 %v754_v22 }
  0x20   : > { %328 = vmatpush.bf16.msra.mxu0 %v745_v23 }
  0x21   : > { %390 = vmatpush.bf16.msra.mxu1 %v737_v24 }
  0x22   : > { %470 = vmatpush.bf16.msra.mxu2 %v753_v27 }
  0x24   : > { %329 = vmatpush.bf16.msra.mxu0 %v744_v28 }
  0x25   : > { %391 = vmatpush.bf16.msra.mxu1 %v736_v29 }
  0x26   : > { %471 = vmatpush.bf16.msra.mxu2 %v752_v32 }
  0x28   : > { %330 = vmatpush.bf16.msra.mxu0 %v743_v35 }
  0x29   : > { %392 = vmatpush.bf16.msra.mxu1 %v735_v36 }
  0x2a   : > { %472 = vmatpush.bf16.msra.mxu2 %v751_v38 }
  0x2b   : > { %331 = vmatmul.bf16.vlgmr.msra.gmra.mxu0 %v257_v40 }
  0x2c   : > { %681 = vmatmul.msk.bf16.vlgmr.msra.gmra.mxu1 %vm679_vm4, %v680_v41 }
  0x2d   : > { %732 = vmatmul.msk.bf16.vlgmr.msra.gmra.mxu2 %vm730_vm5, %v731_v42 }
  0xa8   : > { %v332_v43 = vpop.f32.mrf.mxu0 }
  0xa9   : > { %v394_v44 = vpop.f32.mrf.mxu1 }
  0xaa   : > { %v395_v45 = vadd.f32 %v394_v44, %v332_v43 }
  0xb0   : > { %v474_v46 = vpop.f32.mrf.mxu2  ;;  %v334_v48 = vpop.f32.mrf.mxu0 }
  0xb1   : > { %v479_v47 = vadd.f32 %v474_v46, %v395_v45  ;;  %v396_v49 = vpop.f32.mrf.mxu1 }
  0xb2   : > { %v397_v50 = vadd.f32 %v396_v49, %v334_v48 }
  0xb3   : > { %481 = vst [vmem:[%s206_s6] sm:$0xff] %v479_v47  ;;  %v490_v53 = vmul.f32 %v479_v47, %v479_v47 }
  0xb8   : > { %v476_v51 = vpop.f32.mrf.mxu2 }
  0xb9   : > { %v480_v52 = vadd.f32 %v476_v51, %v397_v50 }
  0xbb   : > { %482 = vst [vmem:[%s206_s6 + $0x8] sm:$0xff] %v480_v52  ;;  %v483_v54 = vadd.f32 %v480_v52, %v479_v47  ;;  %v491_v55 = vmul.f32 %v480_v52, %v480_v52 }
  0xbd   : > { %v484_v56 = vrot.slane %v483_v54, 4  ;;  %v492_v57 = vadd.f32 %v491_v55, %v490_v53 }
  0xbf   : > { %v485_v58 = vadd.f32 %v484_v56, %v483_v54  ;;  %v493_v59 = vrot.slane %v492_v57, 4 }
  0xc1   : > { %v486_v60 = vrot.slane %v485_v58, 2  ;;  %v494_v61 = vadd.f32 %v493_v59, %v492_v57 }
  0xc3   : > { %v487_v62 = vadd.f32 %v486_v60, %v485_v58  ;;  %v495_v63 = vrot.slane %v494_v61, 2 }
  0xc5   : > { %v488_v0 = vrot.slane %v487_v62, 1  ;;  %v496_v1 = vadd.f32 %v495_v63, %v494_v61 }
  0xc7   : > { %v497_v2 = vrot.slane %v496_v1, 1  ;;  %v489_v3 = vadd.f32 %v488_v0, %v487_v62 }
  0xc9   : > { %v498_v4 = vadd.f32 %v497_v2, %v496_v1 }
  0xcb   : > { %v499_v5 = vsel %vm226_vm0, %v489_v3, %v498_v4 }
  0xcc   : > { %500 = vst [vmem:[%s211_s8] sm:$0x3] %v499_v5 }
  0xcd PF: > { %s15_s15 = sadd.s32 1, %s776_s15  }
  0xce   : > { %p12_p5 = scmp.ge.s32.totalorder %s15_s15, 4  }
  0xd0   :  { %14 = sbr.rel (!%p12_p5) target bundleno = 1 (0x1), region = 76 }

// kernel: preact_basic_block.5
= control target key start
LH: loop header
LB: loop body
LE: loop exit
PB: predicated region body
PF: predicated region fallthrough
CT: control target
= control target key end

     0   :  { %s783_s15 = smov 0   ;;  %s888_s0 = inlined_call_operand.vmem [shape: f32[32,128], index: 0, kind: input, shape index: {}]   ;;  %s889_s1 = inlined_call_operand.vmem [shape: f32[32,128], index: 1, kind: input, shape index: {}]   ;;  %s890_s2 = inlined_call_operand.vmem [shape: f32[2,128], index: 2, kind: input, shape index: {}]   ;;  %s891_s3 = inlined_call_operand.vmem [shape: bf16[3,128,128], index: 3, kind: input, shape index: {}]   ;;  %s892_s4 = inlined_call_operand.vmem [shape: f32[32,128], index: 4, kind: output, shape index: {}]  }
   0x1 LB: > { %s566_s16 = sadd.s32 4294967295, %s755_s15   ;;  %p570_p0 = scmp.ge.s32.totalorder %s755_s15, 1  ;;  %s755_s15 = sphi %s783_s15, %s14_s15  }
   0x2   : > { %p174_p1 = scmp.lt.s32.totalorder %s755_s15, 3 }
   0x4   : > { %p175_p2 = pnand %p570_p0, %p174_p1 }
   0x5   : > { %s571_s23 = sshll.u32 (!%p175_p2), %s566_s16, 1 }
   0x6   : > { %178 = sbr.rel (%p175_p2) target bundleno = 190 (0xbe), region = 36  ;;  %p206_p3 = scmp.lt.s32.totalorder (!%p175_p2), %s571_s23, 3 }
   0xb   : > { %v729_v0 = vld [vmem:[%s891_s3 + $0x78] sm:$0xff]  ;;  %v728_v3 = vld [vmem:[%s891_s3 + $0x70] sm:$0xff]  ;;  %s894_s23 = smov (!%p206_p3, %s571_s23), 3  ;;  %v727_v6 = vld [vmem:[%s891_s3 + $0x68] sm:$0xff]  ;;  %vm237_vm0 = vcmask 1040384   ;;  %vm244_vm1 = vcmask 1046528  }
   0xc   : > { %v721_v1 = vld [vmem:[%s891_s3 + $0x38] sm:$0xff]  ;;  %334 = vmatpush.bf16.msra.mxu0 %v729_v0  ;;  %v720_v4 = vld [vmem:[%s891_s3 + $0x30] sm:$0xff]  ;;  %s809_s30 = sshll.u32 %s894_s23, 3  ;;  %v719_v7 = vld [vmem:[%s891_s3 + $0x28] sm:$0xff]  ;;  %vm757_vm3 = vmmov 1  }
   0xd   : > { %v737_v2 = vld [vmem:[%s891_s3 + $0xb8] sm:$0xff]  ;;  %396 = vmatpush.bf16.msra.mxu1 %v721_v1  ;;  %v736_v5 = vld [vmem:[%s891_s3 + $0xb0] sm:$0xff]  ;;  %s209_s11 = scalar_lea.vmem %s888_s0, %s809_s30  ;;  %v735_v8 = vld [vmem:[%s891_s3 + $0xa8] sm:$0xff]  ;;  %s215_s27 = scalar_lea.vmem %s889_s1, %s809_s30 }
   0xe   : > { %476 = vmatpush.bf16.msra.mxu2 %v737_v2  ;;  %v223_v9 = vld [vmem:[%s209_s11] sm:$0xff]  ;;  %v224_v10 = vld [vmem:[%s209_s11 + $0x8] sm:$0xff]  ;;  %v725_v18 = vld [vmem:[%s891_s3 + $0x58] sm:$0xff]  ;;  %s221_s5 = scalar_lea.vmem %s892_s4, %s809_s30 }
   0xf   : > { %v747_v11 = vld [vmem:[%s890_s2] ss:$0 sm:$0xff]  ;;  %v748_v14 = vld [vmem:[%s890_s2 + $0x1] ss:$0 sm:$0xff]  ;;  %v717_v19 = vld [vmem:[%s891_s3 + $0x18] sm:$0xff] }
  0x10   : > { %335 = vmatpush.bf16.msra.mxu0 %v728_v3  ;;  %v726_v12 = vld [vmem:[%s891_s3 + $0x60] sm:$0xff]  ;;  %v227_v16 = vmul.f32 %v747_v11, %v223_v9  ;;  %v228_v17 = vmul.f32 %v747_v11, %v224_v10  ;;  %v733_v22 = vld [vmem:[%s891_s3 + $0x98] sm:$0xff]  ;;  %v724_v23 = vld [vmem:[%s891_s3 + $0x50] sm:$0xff] }
  0x11   : > { %397 = vmatpush.bf16.msra.mxu1 %v720_v4  ;;  %v718_v13 = vld [vmem:[%s891_s3 + $0x20] sm:$0xff]  ;;  %v716_v24 = vld [vmem:[%s891_s3 + $0x10] sm:$0xff]  ;;  %v723_v28 = vld [vmem:[%s891_s3 + $0x48] sm:$0xff] }
  0x12   : > { %477 = vmatpush.bf16.msra.mxu2 %v736_v5  ;;  %v734_v15 = vld [vmem:[%s891_s3 + $0xa0] sm:$0xff]  ;;  %v231_v20 = vadd.f32 %v748_v14, %v227_v16  ;;  %v232_v21 = vadd.f32 %v748_v14, %v228_v17  ;;  %v732_v27 = vld [vmem:[%s891_s3 + $0x90] sm:$0xff]  ;;  %v715_v29 = vld [vmem:[%s891_s3 + $0x8] sm:$0xff] }
  0x13   : > { %v731_v32 = vld [vmem:[%s891_s3 + $0x88] sm:$0xff]  ;;  %v722_v35 = vld [vmem:[%s891_s3 + $0x40] sm:$0xff]  ;;  %vm657_vm2 = vmneg %vm237_vm0 }
  0x14   : > { %336 = vmatpush.bf16.msra.mxu0 %v727_v6  ;;  %v233_v25 = vmax.f32 %v231_v20, 0.0  ;;  %v234_v26 = vmax.f32 %v232_v21, 0.0  ;;  %v714_v36 = vld [vmem:[%s891_s3] sm:$0xff]  ;;  %vm658_vm4 = vmpackc.low %vm757_vm3, %vm657_vm2  ;;  %v493_v54 = vld [vmem:[%s215_s27 + $0x8] sm:$0xff] }
  0x15   : > { %398 = vmatpush.bf16.msra.mxu1 %v719_v7  ;;  %v730_v38 = vld [vmem:[%s891_s3 + $0x80] sm:$0xff]  ;;  %vm709_vm5 = vmpackc.low %vm244_vm1, %vm757_vm3 }
  0x16   : > { %478 = vmatpush.bf16.msra.mxu2 %v735_v8  ;;  %v238_v30 = vrot.slane %v233_v25, 7  ;;  %v239_v31 = vrot.slane %v234_v26, 7  ;;  %v245_v33 = vrot.slane %v233_v25, 1  ;;  %v246_v34 = vrot.slane %v234_v26, 1  ;;  %v492_v47 = vld [vmem:[%s215_s27] sm:$0xff] }
  0x17   : > { %v268_v40 = vpack.c.bf16 %v234_v26, %v233_v25 }
  0x18   : > { %337 = vmatpush.bf16.msra.mxu0 %v726_v12  ;;  %v240_v37 = vsel %vm237_vm0, %v238_v30, %v239_v31  ;;  %v247_v39 = vsel %vm244_vm1, %v245_v33, %v246_v34 }
  0x19   : > { %399 = vmatpush.bf16.msra.mxu1 %v718_v13  ;;  %v659_v41 = vpack.c.bf16 %v240_v37, %v238_v30  ;;  %v710_v42 = vpack.c.bf16 %v246_v34, %v247_v39 }
  0x1a   : > { %479 = vmatpush.bf16.msra.mxu2 %v734_v15 }
  0x1c   : > { %338 = vmatpush.bf16.msra.mxu0 %v725_v18 }
  0x1d   : > { %400 = vmatpush.bf16.msra.mxu1 %v717_v19 }
  0x1e   : > { %480 = vmatpush.bf16.msra.mxu2 %v733_v22 }
  0x20   : > { %339 = vmatpush.bf16.msra.mxu0 %v724_v23 }
  0x21   : > { %401 = vmatpush.bf16.msra.mxu1 %v716_v24 }
  0x22   : > { %481 = vmatpush.bf16.msra.mxu2 %v732_v27 }
  0x24   : > { %340 = vmatpush.bf16.msra.mxu0 %v723_v28 }
  0x25   : > { %402 = vmatpush.bf16.msra.mxu1 %v715_v29 }
  0x26   : > { %482 = vmatpush.bf16.msra.mxu2 %v731_v32 }
  0x28   : > { %341 = vmatpush.bf16.msra.mxu0 %v722_v35 }
  0x29   : > { %403 = vmatpush.bf16.msra.mxu1 %v714_v36 }
  0x2a   : > { %483 = vmatpush.bf16.msra.mxu2 %v730_v38 }
  0x2b   : > { %342 = vmatmul.bf16.vlgmr.msra.gmra.mxu0 %v268_v40 }
  0x2c   : > { %660 = vmatmul.msk.bf16.vlgmr.msra.gmra.mxu1 %vm658_vm4, %v659_v41 }
  0x2d   : > { %711 = vmatmul.msk.bf16.vlgmr.msra.gmra.mxu2 %vm709_vm5, %v710_v42 }
  0xa8   : > { %v343_v43 = vpop.f32.mrf.mxu0 }
  0xa9   : > { %v405_v44 = vpop.f32.mrf.mxu1 }
  0xaa   : > { %v406_v45 = vadd.f32 %v405_v44, %v343_v43 }
  0xb0   : > { %v485_v46 = vpop.f32.mrf.mxu2  ;;  %v345_v50 = vpop.f32.mrf.mxu0 }
  0xb1   : > { %v490_v48 = vadd.f32 %v485_v46, %v406_v45  ;;  %v407_v51 = vpop.f32.mrf.mxu1 }
  0xb2   : > { %v408_v52 = vadd.f32 %v407_v51, %v345_v50 }
  0xb3   : > { %v494_v49 = vadd.f32 %v492_v47, %v490_v48 }
  0xb5   : > { %496 = vst [vmem:[%s221_s5] sm:$0xff] %v494_v49 }
  0xb8   : > { %v487_v53 = vpop.f32.mrf.mxu2 }
  0xb9   : > { %v491_v55 = vadd.f32 %v487_v53, %v408_v52 }
  0xbb   : > { %v495_v56 = vadd.f32 %v493_v54, %v491_v55 }
  0xbd   : > { %497 = vst [vmem:[%s221_s5 + $0x8] sm:$0xff] %v495_v56 }
  0xbe PF: > { %s14_s15 = sadd.s32 1, %s755_s15  }
  0xbf   : > { %p11_p4 = scmp.ge.s32.totalorder %s14_s15, 4  }
  0xc1   :  { %13 = sbr.rel (!%p11_p4) target bundleno = 1 (0x1), region = 71 }

</bundles_post_ra>
